<compile_context>
chip_gen: v7x
topology: tpu7x:2x2x1
jax: 0.10.0
libtpu: 0.0.40
codegen_flags: <defaults>
</compile_context>

<pallas_src>
import jax
import jax.numpy as jnp
from jax import lax
from jax.experimental import pallas as pl
from jax.experimental.pallas import tpu as pltpu

LANE = 128
_BLOCK_BYTES = 4 * 1024 * 1024                     # ~4 MiB per input block
_WIDTH_CANDIDATES = (2048, 1024, 512, 256, 128)    # widest lane-dense width dividing n


def _vmem_limit_bytes():
    """Explicit scoped-VMEM limit: ~48 MiB on v5e/v6e (128 MiB physical),
    clamped to 3/4 of physical VMEM on v7x (64 MiB physical)."""
    try:
        phys = int(pltpu.get_tpu_info().vmem_capacity_bytes)
        return min(48 * 1024 * 1024, (phys * 3) // 4)
    except Exception:
        return 40 * 1024 * 1024                    # safe on every generation


def _make_kernel(block_rows, n_rows, need_row_mask):
    """Per-block kernel; static config is closed over (no scalar prefetch)."""

    def kernel(x_ref, t_ref, psum_ref):
        x = x_ref[...].astype(jnp.float32)
        t = t_ref[...].astype(jnp.float32)
        d = x - t
        if need_row_mask:
            i = pl.program_id(0)
            last = pl.num_programs(0) - 1

            # Hot path: every block except the last is full -> unmasked reduce.
            @pl.when(i != last)
            def _():
                psum_ref[0, 0] = jnp.sum(d * d)

            # Only the final (ragged) block pays for iota/compare/select.
            @pl.when(i == last)
            def _():
                row0 = i * block_rows
                rows = lax.broadcasted_iota(jnp.int32, d.shape, 0) + row0
                dm = jnp.where(rows < n_rows, d, 0.0)
                psum_ref[0, 0] = jnp.sum(dm * dm)
        else:
            psum_ref[0, 0] = jnp.sum(d * d)

    return kernel


def _in_spec(block_rows, width, num_blocks):
    idx = lambda i: (i, 0)
    if num_blocks >= 4:
        # Third pipeline buffer keeps one more HBM copy per stream in flight.
        try:
            return pl.BlockSpec((block_rows, width), idx,
                                pipeline_mode=pl.Buffered(3))
        except TypeError:
            pass
    return pl.BlockSpec((block_rows, width), idx)


def _slab_sum_sq_diff(x2, t2):
    """Sum of squared differences over a lane-dense (n_rows, width) f-slab."""
    n_rows, width = x2.shape
    itemsize = jnp.dtype(x2.dtype).itemsize
    # dtype-native sublane alignment: 8 (f32), 16 (bf16), 32 (int8/fp8).
    sub_align = max(8, 32 // itemsize)

    # ---- block sizing: ~4 MiB per input block, dtype-aligned sublanes --------
    block_rows = (_BLOCK_BYTES // (width * itemsize)) // sub_align * sub_align
    block_rows = max(sub_align, block_rows)
    if block_rows >= n_rows:
        block_rows = n_rows                        # full-extent block is legal
    num_blocks = pl.cdiv(n_rows, block_rows)

    # Guarantee >= 2 grid steps where possible so the "parallel" axis actually
    # shards across both TensorCores on v7x.
    if num_blocks == 1 and n_rows >= 2 * sub_align:
        half = -(-((n_rows + 1) // 2) // sub_align) * sub_align
        if half < n_rows:
            block_rows = half
            num_blocks = pl.cdiv(n_rows, block_rows)

    need_row_mask = (n_rows % block_rows) != 0
    kernel = _make_kernel(block_rows, n_rows, need_row_mask)

    bytes_in = (x2.size * itemsize
                + t2.size * jnp.dtype(t2.dtype).itemsize)

    partials = pl.pallas_call(
        kernel,
        out_shape=jax.ShapeDtypeStruct((num_blocks, 1), jnp.float32),
        grid_spec=pltpu.PrefetchScalarGridSpec(
            num_scalar_prefetch=0,
            grid=(num_blocks,),
            in_specs=[
                _in_spec(block_rows, width, num_blocks),
                _in_spec(block_rows, width, num_blocks),
            ],
            # Each grid step writes its own (1,1) partial -> no resident
            # accumulator -> the axis is fully parallel (both TCs on v7x).
            out_specs=pl.BlockSpec((1, 1), lambda i: (i, 0),
                                   memory_space=pltpu.SMEM),
        ),
        compiler_params=pltpu.CompilerParams(
            dimension_semantics=("parallel",),
            vmem_limit_bytes=_vmem_limit_bytes(),
        ),
        cost_estimate=pl.CostEstimate(
            flops=3 * x2.size,                     # sub + mul + add-reduce
            transcendentals=0,
            bytes_accessed=bytes_in + num_blocks * 4,
        ),
    )(x2, t2)

    return jnp.sum(partials)


def content_loss_forward(x, target):
    """Returns (output, loss): output is x (identity), loss == mean((x - target)**2)."""
    assert x.shape == target.shape, "input/target shape mismatch"
    n_elems = x.size

    x_flat = x.reshape(-1)
    t_flat = target.reshape(-1)

    # ---- choose a zero-copy lane-dense 2D view -------------------------------
    width = None
    for w in _WIDTH_CANDIDATES:
        if n_elems % w == 0:
            width = w
            break

    if width is not None:
        n_rows = n_elems // width
        ssq = _slab_sum_sq_diff(x_flat.reshape(n_rows, width),
                                t_flat.reshape(n_rows, width))
    else:
        # Ragged size (n % 128 != 0): kernel over the lane-aligned prefix,
        # tiny (<128 elem) tail reduced in plain JAX -- no full-array pad/copy.
        main = (n_elems // LANE) * LANE
        tail_ssq = jnp.sum(
            (x_flat[main:].astype(jnp.float32)
             - t_flat[main:].astype(jnp.float32)) ** 2)
        if main == 0:
            ssq = tail_ssq
        else:
            ssq = tail_ssq + _slab_sum_sq_diff(
                x_flat[:main].reshape(main // LANE, LANE),
                t_flat[:main].reshape(main // LANE, LANE))

    loss = ssq / jnp.float32(n_elems)
    # Identity passthrough handled in the wrapper: no extra HBM write stream.
    return x, loss


if __name__ == "__main__":
    key = jax.random.PRNGKey(0)
    fwd = jax.jit(content_loss_forward)

    # Small NCHW shape consistent with a conv feature map (primary check).
    kx, kt = jax.random.split(key)
    x = jax.random.normal(kx, (2, 4, 16, 16), dtype=jnp.float32)
    target = jax.random.normal(kt, (2, 4, 16, 16), dtype=jnp.float32)
    out, loss = fwd(x, target)
    jax.block_until_ready((out, loss))
    ref_loss = jnp.mean((x - target) ** 2)
    assert jnp.allclose(out, x), "passthrough mismatch"
    assert jnp.allclose(loss, ref_loss, rtol=1e-5, atol=1e-6), (loss, ref_loss)

    # Multi-block path (exercises the >=2-step parallel grid).
    kx2, kt2 = jax.random.split(jax.random.PRNGKey(1))
    x2 = jax.random.normal(kx2, (2, 8, 32, 64), dtype=jnp.float32)
    t2 = jax.random.normal(kt2, (2, 8, 32, 64), dtype=jnp.float32)
    out2, loss2 = fwd(x2, t2)
    jax.block_until_ready((out2, loss2))
    ref2 = jnp.mean((x2 - t2) ** 2)
    assert jnp.allclose(loss2, ref2, rtol=1e-5, atol=1e-6), (loss2, ref2)

    # Ragged path (n % 128 != 0): kernel prefix + JAX tail.
    kx3, kt3 = jax.random.split(jax.random.PRNGKey(2))
    x3 = jax.random.normal(kx3, (2, 3, 7, 5), dtype=jnp.float32)
    t3 = jax.random.normal(kt3, (2, 3, 7, 5), dtype=jnp.float32)
    out3, loss3 = fwd(x3, t3)
    jax.block_until_ready((out3, loss3))
    ref3 = jnp.mean((x3 - t3) ** 2)
    assert jnp.allclose(loss3, ref3, rtol=1e-5, atol=1e-6), (loss3, ref3)

    print("KERNEL_OK")
</pallas_src>

<mosaic_0001>
module attributes {stable_mosaic.version = 11 : i64} {
  func.func @kernel(%arg0: i32, %arg1: memref<1x2048xf32, #tpu.memory_space<vmem>>, %arg2: memref<1x2048xf32, #tpu.memory_space<vmem>>, %arg3: memref<1x1xf32, #tpu.memory_space<smem>>) attributes {dimension_semantics = [#tpu.dimension_semantics<parallel>], iteration_bounds = array<i64: 1>, scalar_prefetch = 0 : i64, scratch_operands = 0 : i64, tpu.core_type = #tpu.core_type<tc>, window_params = [{transform_indices = @transform_0, window_bounds = array<i64: 1, 2048>}, {transform_indices = @transform_1, window_bounds = array<i64: 1, 2048>}, {transform_indices = @transform_2, window_bounds = array<i64: 1, 1>}]} {
    %c0 = arith.constant 0 : index
    %c0_0 = arith.constant 0 : index
    %0 = vector.load %arg1[%c0, %c0_0] : memref<1x2048xf32, #tpu.memory_space<vmem>>, vector<1x2048xf32>
    %c0_1 = arith.constant 0 : index
    %c0_2 = arith.constant 0 : index
    %1 = vector.load %arg2[%c0_1, %c0_2] : memref<1x2048xf32, #tpu.memory_space<vmem>>, vector<1x2048xf32>
    %2 = arith.subf %0, %1 : vector<1x2048xf32>
    %3 = arith.mulf %2, %2 : vector<1x2048xf32>
    %4 = vector.shape_cast %3 : vector<1x2048xf32> to vector<1x1x2048xf32>
    %cst = arith.constant dense<0.000000e+00> : vector<1xf32>
    %5 = vector.multi_reduction <add>, %4, %cst [1, 2] : vector<1x1x2048xf32> to vector<1xf32>
    %6 = vector.shape_cast %5 : vector<1xf32> to vector<1x1x1xf32>
    %7 = vector.extract %6[0, 0, 0] : f32 from vector<1x1x1xf32>
    %c0_3 = arith.constant 0 : index
    %c0_4 = arith.constant 0 : index
    %8 = memref.load %arg3[%c0_3, %c0_4] : memref<1x1xf32, #tpu.memory_space<smem>>
    memref.store %7, %arg3[%c0_3, %c0_4] : memref<1x1xf32, #tpu.memory_space<smem>>
    return
  }
  func.func @transform_0(%arg0: i32) -> (i32, i32) {
    %c0_i32 = arith.constant 0 : i32
    %c0_i32_0 = arith.constant 0 : i32
    return %arg0, %c0_i32 : i32, i32
  }
  func.func @transform_1(%arg0: i32) -> (i32, i32) {
    %c0_i32 = arith.constant 0 : i32
    %c0_i32_0 = arith.constant 0 : i32
    return %arg0, %c0_i32 : i32, i32
  }
  func.func @transform_2(%arg0: i32) -> (i32, i32) {
    %c0_i32 = arith.constant 0 : i32
    %c0_i32_0 = arith.constant 0 : i32
    return %arg0, %c0_i32 : i32, i32
  }
}

</mosaic_0001>

<bundles_post_ra>
// kernel: content_loss_forward.1
= control target key start
LH: loop header
LB: loop body
LE: loop exit
PB: predicated region body
PF: predicated region fallthrough
CT: control target
= control target key end

     0   :  { %v22_v2 = vlaneseq  ;;  %s229_s0 = inlined_call_operand.vmem [shape: f32[1,2048], index: 0, kind: input, shape index: {}]   ;;  %s230_s1 = inlined_call_operand.vmem [shape: f32[1,2048], index: 1, kind: input, shape index: {}]   ;;  %s231_s2 = inlined_call_operand.hbm [shape: f32[1,1], index: 2, kind: output, shape index: {}]  }
   0x1   :  { %v12_v0 = vld [vmem:[%s229_s0] sm:$0xff] }
   0x2   :  { %v14_v1 = vld [vmem:[%s230_s1] sm:$0xff] }
   0x3   :  { %v16_v3 = vsub.f32 %v12_v0, %v14_v1 }
   0x4   :  { %7 = vsyncpa [#allocation3], 0  ;;  %v23_v4 = vshrl.u32 %v22_v2, 7  ;;  %v13_v10 = vld [vmem:[%s229_s0 + $0x8] sm:$0xff]  ;;  %vm102_vm0 = vcmask 1040384   ;;  %s161_s18 = scalar_lea.hbm %s231_s2, 16 }
   0x5   :  { %v18_v5 = vmul.f32 %v16_v3, %v16_v3  ;;  %v15_v11 = vld [vmem:[%s230_s1 + $0x8] sm:$0xff]  ;;  %p162_p0 = scmp.ne.s32.totalorder %s231_s2, %s161_s18  ;;  %p165_p1 = scmp.lt.u32.totalorder %s161_s18, %s231_s2 }
   0x6   :  { %v24_v6 = vsub.s32 0, %v23_v4  ;;  %v28_v7 = vsub.s32 1, %v23_v4  ;;  %v32_v8 = vsub.s32 2, %v23_v4  ;;  %v36_v9 = vsub.s32 3, %v23_v4 }
   0x7   :  { %v40_v15 = vsub.s32 4, %v23_v4  ;;  %v44_v17 = vsub.s32 5, %v23_v4  ;;  %v17_v18 = vsub.f32 %v13_v10, %v15_v11  ;;  %v48_v19 = vsub.s32 6, %v23_v4  ;;  %p167_p2 = pnand %p165_p1, %p162_p0 }
   0x8   :  { %v25_v12 = vrot.slane %v18_v5, %v24_v6  ;;  %v29_v13 = vrot.slane %v18_v5, %v28_v7  ;;  %v33_v14 = vrot.slane %v18_v5, %v32_v8  ;;  %v37_v16 = vrot.slane %v18_v5, %v36_v9 }
   0x9   :  { %v41_v20 = vrot.slane %v18_v5, %v40_v15  ;;  %v45_v25 = vrot.slane %v18_v5, %v44_v17  ;;  %v52_v26 = vsub.s32 7, %v23_v4  ;;  %v19_v29 = vmul.f32 %v17_v18, %v17_v18 }
   0xa   :  { %v103_v21 = vsel %vm102_vm0, %v25_v12, 0.0  ;;  %v104_v22 = vsel %vm102_vm0, %v29_v13, 0.0  ;;  %v106_v23 = vsel %vm102_vm0, %v33_v14, 0.0  ;;  %v108_v27 = vsel %vm102_vm0, %v37_v16, 0.0 }
   0xb   :  { %v105_v24 = vadd.f32 %v104_v22, %v103_v21  ;;  %v49_v30 = vrot.slane %v18_v5, %v48_v19  ;;  %v110_v31 = vsel %vm102_vm0, %v41_v20, 0.0  ;;  %v53_v33 = vrot.slane %v18_v5, %v52_v26 }
   0xc   :  { %v112_v34 = vsel %vm102_vm0, %v45_v25, 0.0  ;;  %v57_v36 = vrot.slane %v19_v29, %v24_v6  ;;  %v61_v39 = vrot.slane %v19_v29, %v28_v7  ;;  %v65_v42 = vrot.slane %v19_v29, %v32_v8 }
   0xd   :  { %v107_v28 = vadd.f32 %v106_v23, %v105_v24  ;;  %v114_v37 = vsel %vm102_vm0, %v49_v30, 0.0  ;;  %v116_v40 = vsel %vm102_vm0, %v53_v33, 0.0  ;;  %v69_v45 = vrot.slane %v19_v29, %v36_v9 }
   0xe   :  { %v118_v43 = vsel %vm102_vm0, %v57_v36, 0.0  ;;  %v120_v46 = vsel %vm102_vm0, %v61_v39, 0.0  ;;  %v73_v48 = vrot.slane %v19_v29, %v40_v15  ;;  %v122_v49 = vsel %vm102_vm0, %v65_v42, 0.0 }
   0xf   :  { %v109_v32 = vadd.f32 %v108_v27, %v107_v28  ;;  %v77_v51 = vrot.slane %v19_v29, %v44_v17  ;;  %v124_v52 = vsel %vm102_vm0, %v69_v45, 0.0  ;;  %v81_v54 = vrot.slane %v19_v29, %v48_v19 }
  0x10   :  { %v126_v55 = vsel %vm102_vm0, %v73_v48, 0.0  ;;  %v85_v57 = vrot.slane %v19_v29, %v52_v26 }
  0x11   :  { %v111_v35 = vadd.f32 %v110_v31, %v109_v32  ;;  %v128_v58 = vsel %vm102_vm0, %v77_v51, 0.0  ;;  %v130_v60 = vsel %vm102_vm0, %v81_v54, 0.0 }
  0x12   :  { %v132_v62 = vsel %vm102_vm0, %v85_v57, 0.0 }
  0x13   :  { %v113_v38 = vadd.f32 %v112_v34, %v111_v35 }
  0x15   :  { %v115_v41 = vadd.f32 %v114_v37, %v113_v38 }
  0x17   :  { %v117_v44 = vadd.f32 %v116_v40, %v115_v41 }
  0x19   :  { %v119_v47 = vadd.f32 %v118_v43, %v117_v44 }
  0x1b   :  { %v121_v50 = vadd.f32 %v120_v46, %v119_v47 }
  0x1d   :  { %v123_v53 = vadd.f32 %v122_v49, %v121_v50 }
  0x1f   :  { %v125_v56 = vadd.f32 %v124_v52, %v123_v53 }
  0x21   :  { %v127_v59 = vadd.f32 %v126_v55, %v125_v56 }
  0x23   :  { %v129_v61 = vadd.f32 %v128_v58, %v127_v59 }
  0x25   :  { %v131_v63 = vadd.f32 %v130_v60, %v129_v61 }
  0x27   :  { %v133_v0 = vadd.f32 %v132_v62, %v131_v63 }
  0x29   :  { %134 = vadd.xlane.f32.xlu0 %v133_v0 }
  0xb6   :  { %v135_v1 = vpop.xlane.xlu0 %134 }
  0xb7   :  { %v136_v2 = vrot.slane %v135_v1, 4 }
  0xb9   :  { %v137_v3 = vadd.f32 %v136_v2, %v135_v1 }
  0xbb   :  { %v138_v4 = vrot.slane %v137_v3, 2 }
  0xbd   :  { %v139_v5 = vadd.f32 %v138_v4, %v137_v3 }
  0xbf   :  { %v140_v6 = vrot.slane %v139_v5, 1 }
  0xc1   :  { %v141_v7 = vadd.f32 %v140_v6, %v139_v5 }
  0xc3   :  { %158 = vpush %v141_v7 }
  0xf4   :  { %s159_s0 = spop %158 }
  0xf5   :  { %144 = sst [smem:[#allocation2]] %s159_s0 }
  0xf6   :  { %170 = shalt.err (!%p167_p2)
}
  0xf7   :  { %s173_s23 = smov [#allocation2]  }
  0xf8   :  { %152 = dma.smem_to_hbm %s173_s23, 16, %s231_s2, [#allocation3]  }
  0xf9   :  { %171 = dma.done.wait [#allocation3], 16  }
  0xfa   :  { %172 = vsyncadd [#allocation3], 4294967280 }
  0xfb   :  { %156 = sfence }
  0xfc   :  { %157 = vsyncpa [#allocation3], 1 }

</bundles_post_ra>
